<compile_context>
chip_gen: v7x
topology: tpu7x:2x2x1
jax: 0.10.0
libtpu: 0.0.40
codegen_flags: <defaults>
</compile_context>

<pallas_src>
import functools
import math

import numpy as np

import jax
import jax.numpy as jnp
from jax.experimental import pallas as pl
from jax.experimental.pallas import tpu as pltpu  # noqa: F401  (TPU backend)

NUM_FACTORS = 5
SOURCE_CENTER_STD_DEV = float(np.sqrt(10.0))
SOURCE_LOG_WIDTH_STD_DEV = float(np.sqrt(3.0))
SOURCE_WEIGHT_STD_DEV = float(np.sqrt(2.0))
VOXEL_NOISE = 0.1

_LANES = 128


def _centers_kernel(num_factors, x_ref, out_ref):
    """x_ref: (2, 128) f32 — row 0 = brain_center (lanes 0..2 valid),
    row 1 = brain_center_std_dev (lanes 0..2 valid, padding lanes = 1.0).

    out_ref: (rows, 128) f32 slab:
        rows [0, K)   : brain_center broadcast along sublanes (centers mu)
        row  K        : log(brain_center_std_dev * sqrt(10))  (centers log_sigma)
        rows (K, rows): zeros (padding)
    Written with one full-vreg, lane-dense, unmasked store.
    """
    x = x_ref[...]                                           # (2, 128)
    bc = x[0:1, :]                                           # (1, 128)
    log_sigma = jnp.log(x[1:2, :] * SOURCE_CENTER_STD_DEV)   # (1, 128)  (EUP)

    rows, lanes = out_ref.shape
    row_idx = jax.lax.broadcasted_iota(jnp.int32, (rows, lanes), 0)
    mu_rows = jnp.broadcast_to(bc, (rows, lanes))
    ls_rows = jnp.broadcast_to(log_sigma, (rows, lanes))
    out_ref[...] = jnp.where(
        row_idx < num_factors, mu_rows,
        jnp.where(row_idx == num_factors, ls_rows, 0.0))


def tfa_generative_hyperparams(brain_center, brain_center_std_dev,
                               num_factors=NUM_FACTORS,
                               voxel_noise=VOXEL_NOISE,
                               num_particles=None):
    """Returns the generative hyper-parameter vardict (nested dict of jnp
    arrays), matching TFAGenerativeHyperParams + state_vardict()."""
    K = int(num_factors)
    rows = ((K + 1 + 7) // 8) * 8          # sublane-aligned slab height (K mu rows + 1 log_sigma row)

    bc = jnp.asarray(brain_center, jnp.float32).reshape(1, 3)
    bcsd = jnp.asarray(brain_center_std_dev, jnp.float32).reshape(1, 3)
    # Single stacked, lane-padded input -> one input DMA, lane-dense tile.
    # Pad with 1.0 so log() on padding lanes stays finite (discarded anyway).
    x = jnp.concatenate([bc, bcsd], axis=0)                  # (2, 3)
    x = jnp.pad(x, ((0, 0), (0, _LANES - 3)), constant_values=1.0)  # (2, 128)

    slab = pl.pallas_call(
        functools.partial(_centers_kernel, K),
        out_shape=jax.ShapeDtypeStruct((rows, _LANES), jnp.float32),
        in_specs=[pl.BlockSpec((2, _LANES), lambda: (0, 0))],
        out_specs=pl.BlockSpec((rows, _LANES), lambda: (0, 0)),
    )(x)

    centers_mu = slab[:K, :3]          # (K, 3)
    centers_log_sigma = slab[K, :3]    # (3,)

    # Compile-time-constant parameters: built outside the kernel (no DMAs / EUP).
    params = {
        'weights': {
            'mu': jnp.zeros((K,), jnp.float32),
            'log_sigma': jnp.full((K,), math.log(SOURCE_WEIGHT_STD_DEV),
                                  jnp.float32),
        },
        'factor_centers': {
            'mu': centers_mu,
            'log_sigma': centers_log_sigma,
        },
        'factor_log_widths': {
            'mu': jnp.ones((K,), jnp.float32),
            'log_sigma': jnp.full((K,), math.log(SOURCE_LOG_WIDTH_STD_DEV),
                                  jnp.float32),
        },
        'voxel_noise': jnp.full((1,), voxel_noise, jnp.float32),
    }

    if num_particles:
        # state_vardict(num_particles): expand each param to (P, *shape).
        params = jax.tree_util.tree_map(
            lambda v: jnp.broadcast_to(v, (num_particles,) + v.shape), params)
    return params


def _reference(brain_center, brain_center_std_dev, num_factors, voxel_noise):
    K = num_factors
    bc = np.asarray(brain_center, np.float32).reshape(3)
    bcsd = np.asarray(brain_center_std_dev, np.float32).reshape(3)
    return {
        'weights': {
            'mu': np.zeros(K, np.float32),
            'log_sigma': np.log(SOURCE_WEIGHT_STD_DEV * np.ones(K, np.float32)),
        },
        'factor_centers': {
            'mu': np.broadcast_to(bc, (K, 3)) * np.ones((K, 3), np.float32),
            'log_sigma': np.log(bcsd * SOURCE_CENTER_STD_DEV),
        },
        'factor_log_widths': {
            'mu': np.ones(K, np.float32),
            'log_sigma': np.log(SOURCE_LOG_WIDTH_STD_DEV * np.ones(K, np.float32)),
        },
        'voxel_noise': np.ones(1, np.float32) * voxel_noise,
    }


if __name__ == "__main__":
    key = jax.random.PRNGKey(0)
    k1, k2 = jax.random.split(key)
    # brain_center ~ mean voxel location (3,), brain_center_std_dev > 0 (3,)
    brain_center = jax.random.normal(k1, (3,), dtype=jnp.float32) * 10.0
    brain_center_std_dev = jnp.abs(jax.random.normal(k2, (3,), dtype=jnp.float32)) + 1.0

    out = tfa_generative_hyperparams(brain_center, brain_center_std_dev,
                                     num_factors=NUM_FACTORS,
                                     voxel_noise=VOXEL_NOISE)
    out = jax.block_until_ready(out)

    ref = _reference(np.asarray(brain_center), np.asarray(brain_center_std_dev),
                     NUM_FACTORS, VOXEL_NOISE)

    flat_out, _ = jax.tree_util.tree_flatten(out)
    flat_ref, _ = jax.tree_util.tree_flatten(ref)
    for o, r in zip(flat_out, flat_ref):
        np.testing.assert_allclose(np.asarray(o), r, rtol=1e-6, atol=1e-6)

    # Also exercise the state_vardict particle expansion path (plain-JAX glue).
    out_p = jax.block_until_ready(
        tfa_generative_hyperparams(brain_center, brain_center_std_dev,
                                   num_particles=4))
    assert out_p['factor_centers']['mu'].shape == (4, NUM_FACTORS, 3)
    assert out_p['weights']['mu'].shape == (4, NUM_FACTORS)
    np.testing.assert_allclose(
        np.asarray(out_p['factor_centers']['log_sigma'][2]),
        ref['factor_centers']['log_sigma'], rtol=1e-6, atol=1e-6)

    print("KERNEL_OK")
</pallas_src>

<mosaic_0001>
module attributes {stable_mosaic.version = 11 : i64} {
  func.func @_centers_kernel(%arg0: memref<2x128xf32, #tpu.memory_space<vmem>>, %arg1: memref<8x128xf32, #tpu.memory_space<vmem>>) attributes {dimension_semantics = [], scalar_prefetch = 0 : i64, scratch_operands = 0 : i64, tpu.core_type = #tpu.core_type<tc>} {
    %c0 = arith.constant 0 : index
    %c0_0 = arith.constant 0 : index
    %0 = vector.load %arg0[%c0, %c0_0] : memref<2x128xf32, #tpu.memory_space<vmem>>, vector<2x128xf32>
    %1 = vector.extract_strided_slice %0 {offsets = [0, 0], sizes = [1, 128], strides = [1, 1]} : vector<2x128xf32> to vector<1x128xf32>
    %2 = vector.extract_strided_slice %0 {offsets = [1, 0], sizes = [1, 128], strides = [1, 1]} : vector<2x128xf32> to vector<1x128xf32>
    %cst = arith.constant 3.1622777 : f32
    %3 = vector.broadcast %cst : f32 to vector<1x128xf32>
    %4 = arith.mulf %2, %3 : vector<1x128xf32>
    %5 = math.log %4 : vector<1x128xf32>
    %6 = tpu.iota {dimensions = array<i32: 0>} : vector<8x128xi32>
    %7 = vector.shape_cast %1 : vector<1x128xf32> to vector<1x128xf32>
    %8 = vector.broadcast %7 : vector<1x128xf32> to vector<8x128xf32>
    %9 = vector.shape_cast %5 : vector<1x128xf32> to vector<1x128xf32>
    %10 = vector.broadcast %9 : vector<1x128xf32> to vector<8x128xf32>
    %c5_i32 = arith.constant 5 : i32
    %11 = vector.broadcast %c5_i32 : i32 to vector<8x128xi32>
    %12 = arith.cmpi slt, %6, %11 : vector<8x128xi32>
    %c5_i32_1 = arith.constant 5 : i32
    %13 = vector.broadcast %c5_i32_1 : i32 to vector<8x128xi32>
    %14 = arith.cmpi eq, %6, %13 : vector<8x128xi32>
    %cst_2 = arith.constant 0.000000e+00 : f32
    %15 = vector.broadcast %cst_2 : f32 to vector<8x128xf32>
    %16 = arith.select %14, %10, %15 : vector<8x128xi1>, vector<8x128xf32>
    %17 = arith.select %12, %8, %16 : vector<8x128xi1>, vector<8x128xf32>
    %c0_3 = arith.constant 0 : index
    %c0_4 = arith.constant 0 : index
    %18 = vector.load %arg1[%c0_3, %c0_4] : memref<8x128xf32, #tpu.memory_space<vmem>>, vector<8x128xf32>
    tpu.vector_store %arg1[%c0_3, %c0_4], %17 {strides = array<i32>} : memref<8x128xf32, #tpu.memory_space<vmem>>, vector<8x128xf32>,
    return
  }
}

</mosaic_0001>

<bundles_post_ra>
// kernel: tpu_custom_call.1
= control target key start
LH: loop header
LB: loop body
LE: loop exit
PB: predicated region body
PF: predicated region fallthrough
CT: control target
= control target key end

     0   :  { %6 = vsyncpa [#allocation3], 0  ;;  %s143_s0 = inlined_call_operand.hbm [shape: f32[2,128], index: 0, kind: input, shape index: {}]   ;;  %s144_s1 = inlined_call_operand.hbm [shape: f32[8,128], index: 1, kind: output, shape index: {}]  }
   0x1   :  { %7 = vsyncpa [#allocation4], 0  ;;  %s107_s6 = smov [#allocation2]   ;;  %s59_s10 = scalar_lea.hbm %s143_s0, 32 }
   0x2   :  { %s14_s7 = sshll.u32 %s107_s6, 4  ;;  %p60_p0 = scmp.ne.s32.totalorder %s143_s0, %s59_s10  ;;  %s15_s7 = int_to_ptr.vmem [resolvable:$true] %s14_s7 }
   0x3   :  { %p63_p1 = scmp.lt.u32.totalorder %s59_s10, %s143_s0 }
   0x5   :  { %p65_p2 = pnand %p63_p1, %p60_p0 }
   0x7   :  { %68 = shalt.err (!%p65_p2)
}
   0x8   :  { %s69_s15 = scalar_lea.vmem %s15_s7, 32  ;;  %p74_p4 = scmp.lt.s32.totalorder %s15_s7, %s15_s7 }
   0x9   :  { %p70_p3 = scmp.ne.s32.totalorder %s15_s7, %s69_s15  ;;  %p75_p5 = scmp.lt.s32.totalorder %s69_s15, %s69_s15 }
   0xb   :  { %p76_p6 = por %p75_p5, %p74_p4 }
   0xd   :  { %p77_p7 = pnand %p76_p6, %p70_p3 }
   0xf   :  { %80 = shalt.err (!%p77_p7)
}
  0x10   :  { %17 = dma.hbm_to_vmem [thread:$0]  %s143_s0, 32, %s15_s7, [#allocation3]  }
  0x11   :  { %103 = dma.done.wait [#allocation3], 32  }
  0x12   :  { %104 = vsyncadd [#allocation3], 4294967264  ;;  %v21_v0 = vld [vmem:[#allocation2] sm:$0x3]  ;;  %v25_v2 = vlaneseq  ;;  %s108_s18 = smov [#allocation5]  }
  0x13   :  { %v22_v1 = vmul.f32 3.1622777, %v21_v0  ;;  %s46_s19 = sshll.u32 %s108_s18, 4  ;;  %s47_s19 = int_to_ptr.vmem [resolvable:$true] %s46_s19 }
  0x14   :  { %v26_v3 = vshrl.u32 %v25_v2, 7  ;;  %s81_s0 = scalar_lea.vmem %s47_s19, 128  ;;  %p86_p9 = scmp.lt.s32.totalorder %s47_s19, %s47_s19 }
  0x15   :  { %57 = vlog2.f32 %v22_v1  ;;  %p82_p8 = scmp.ne.s32.totalorder %s47_s19, %s81_s0  ;;  %p87_p10 = scmp.lt.s32.totalorder %s81_s0, %s81_s0 }
  0x16   :  { %v29_v4 = vsub.s32 0, %v26_v3  ;;  %v33_v5 = vsub.s32 1, %v26_v3  ;;  %vm36_vm0 = vcmp.eq.s32.totalorder %v26_v3, 5  ;;  %vm35_vm1 = vcmp.lt.s32.totalorder %v26_v3, 5 }
  0x17   :  { %p88_p11 = por %p87_p10, %p86_p9 }
  0x18   :  { %v30_v8 = vrot.slane %v21_v0, %v29_v4 }
  0x19   :  { %p89_p12 = pnand %p88_p11, %p82_p8 }
  0x1f   :  { %v58_v6 = vpop.eup %57 }
  0x20   :  { %v24_v7 = vmul.f32 0.6931472, %v58_v6 }
  0x22   :  { %v34_v9 = vrot.slane %v24_v7, %v33_v5 }
  0x24   :  { %v37_v10 = vsel %vm36_vm0, %v34_v9, 0.0 }
  0x25   :  { %v38_v11 = vsel %vm35_vm1, %v30_v8, %v37_v10 }
  0x26   :  { %39 = vst [vmem:[#allocation5] sm:$0xff] %v38_v11 }
  0x27   :  { %92 = shalt.err (!%p89_p12)
}
  0x28   :  { %s93_s22 = scalar_lea.hbm %s144_s1, 128 }
  0x29   :  { %p94_p13 = scmp.ne.s32.totalorder %s144_s1, %s93_s22  ;;  %p97_p0 = scmp.lt.u32.totalorder %s93_s22, %s144_s1 }
  0x2b   :  { %p99_p1 = pnand %p97_p0, %p94_p13 }
  0x2d   :  { %102 = shalt.err (!%p99_p1)
}
  0x2e   :  { %49 = dma.vmem_to_hbm [thread:$0]  %s47_s19, 128, %s144_s1, [#allocation4]  }
  0x2f   :  { %105 = dma.done.wait [#allocation4], 128  }
  0x30   :  { %106 = vsyncadd [#allocation4], 4294967168 }
  0x31   :  { %53 = vsyncpa [#allocation3], 1 }
  0x32   :  { %54 = vsyncpa [#allocation4], 1 }

</bundles_post_ra>
